<compile_context>
chip_gen: v5e
topology: v5e:2x2
jax: 0.10.0
libtpu: 0.0.40
codegen_flags: <defaults>
</compile_context>

<pallas_src>
import math

import jax
import jax.numpy as jnp
from jax.experimental import pallas as pl
from jax.experimental.pallas import tpu as pltpu

# ---- small, shape-consistent configuration (hidden_size=768, 12 heads, 12 layers real) ----
B, S, H = 2, 8, 32          # batch, sequence length, hidden size
N_HEADS, D_HEAD = 4, 8      # H = N_HEADS * D_HEAD
INTER = 4 * H               # FFN width
N_LAYERS = 2                # encoder depth
VOCAB, TYPE_VOCAB, MAX_POS = 64, 2, 16
EPS = 1e-12                 # BERT layernorm eps
MM_DTYPE = jnp.bfloat16     # MXU operand dtype (f32 accumulation everywhere)
OUT_PAD = 128               # lane-dense span-head output width (real logits in cols 0..1)
TB = 1                      # batch items per "parallel" grid tile (one sequence per step)

assert H == N_HEADS * D_HEAD and B % TB == 0 and TB == 1


# ----------------------------- fused Pallas kernel -----------------------------

def _layernorm(x, g, b):
    mu = jnp.mean(x, axis=-1, keepdims=True)
    var = jnp.mean(jnp.square(x - mu), axis=-1, keepdims=True)
    return (x - mu) * jax.lax.rsqrt(var + EPS) * g + b


def _mm(a, w_bf16):
    # Activations cast to bf16 at the MXU boundary; weights arrive already bf16.
    return jnp.dot(a.astype(MM_DTYPE), w_bf16, preferred_element_type=jnp.float32)


def _bert_layer_kernel(emb_ref, mask_ref, emb_g_ref, emb_b_ref,
                       wqkv_ref, bqkv_ref, wo_ref, bo_ref, ln1g_ref, ln1b_ref,
                       wi_ref, bi_ref, wo2_ref, bo2_ref, ln2g_ref, ln2b_ref,
                       wspan_ref, out_ref, x_ref):
    """One encoder layer for one sequence per grid step; activations live in x_ref."""
    l = pl.program_id(1)
    rows = TB * S
    scale = 1.0 / math.sqrt(D_HEAD)

    # Layer 0: embedding LayerNorm seeds the VMEM-resident activation carry.
    @pl.when(l == 0)
    def _():
        x_ref[...] = _layernorm(emb_ref[...].reshape(rows, H),
                                emb_g_ref[...], emb_b_ref[...])

    x = x_ref[...]                                               # [rows, H] f32

    # --- self-attention: fused [H, 3H] QKV matmul, head-batched contractions ---
    qkv = _mm(x, wqkv_ref[0]) + bqkv_ref[0]                      # [rows, 3H] f32

    def split_heads(block_2d):                                   # [rows, H] -> [NH, rows, DH]
        t = jnp.transpose(block_2d)                              # [H, rows]   (2-D transpose)
        t = t.reshape(N_HEADS, D_HEAD, rows)                     # major-dim split (layout-safe)
        return jnp.swapaxes(t, 1, 2).astype(MM_DTYPE)            # batched minor-dim transpose

    q = split_heads(qkv[:, 0 * H:1 * H])
    k = split_heads(qkv[:, 1 * H:2 * H])
    v = split_heads(qkv[:, 2 * H:3 * H])

    # one batched contraction over heads (batch dim leading on every operand)
    s = jnp.einsum('nqd,nkd->nqk', q, k,
                   preferred_element_type=jnp.float32) * scale   # [NH, S, S]
    s = s + mask_ref[...]                                        # [1,1,S] broadcast once/layer
    s = s - jnp.max(s, axis=-1, keepdims=True)
    p = jnp.exp(s)
    p = p * pl.reciprocal(jnp.sum(p, axis=-1, keepdims=True), approx=True)

    ctx = jnp.einsum('nqk,nkd->nqd', p.astype(MM_DTYPE), v,
                     preferred_element_type=jnp.float32)         # [NH, S, DH]
    # output projection folded per head, then reduced over heads (no concatenate)
    proj = jnp.einsum('nqd,ndh->nqh', ctx.astype(MM_DTYPE), wo_ref[0],
                      preferred_element_type=jnp.float32)        # [NH, S, H]
    attn_out = jnp.sum(proj, axis=0) + bo_ref[0]                 # [rows, H]

    x = _layernorm(attn_out + x, ln1g_ref[0], ln1b_ref[0])

    # --- feed-forward: dense + GELU + dense, fused with residual + LN ---
    inter = _mm(x, wi_ref[0]) + bi_ref[0]                        # [rows, 4H]
    # TODO(synk): HF BERT uses erf-GELU; tanh approximation keeps a clean EUP path.
    inter = 0.5 * inter * (1.0 + jnp.tanh(
        0.7978845608028654 * (inter + 0.044715 * inter * inter * inter)))
    ffn = _mm(inter, wo2_ref[0]) + bo2_ref[0]
    x = _layernorm(ffn + x, ln2g_ref[0], ln2b_ref[0])

    x_ref[...] = x                                               # carry to next layer step

    # --- span head on the last layer: one [H, 128] lane-dense MXU matmul ---
    @pl.when(l == N_LAYERS - 1)
    def _():
        out_ref[...] = _mm(x, wspan_ref[...]).reshape(TB, S, OUT_PAD)


def bert_qa_pallas(emb, add_mask, pk):
    H3, I, L = 3 * H, INTER, N_LAYERS
    grid = (B // TB, L)                       # ("parallel" over sequences, "arbitrary" over layers)

    def wblk(shape):                          # stacked per-layer weight: fetch layer l's slice
        return pl.BlockSpec((1,) + shape, lambda bi, l: (l,) + (0,) * len(shape))

    def bblk(shape):                          # per-sequence block (same block across layers)
        return pl.BlockSpec(shape, lambda bi, l: (bi,) + (0,) * (len(shape) - 1))

    def cblk(shape):                          # shared constant block
        return pl.BlockSpec(shape, lambda bi, l: (0,) * len(shape))

    out = pl.pallas_call(
        _bert_layer_kernel,
        grid=grid,
        out_shape=jax.ShapeDtypeStruct((B, S, OUT_PAD), jnp.float32),
        in_specs=[
            bblk((TB, S, H)),                          # summed embeddings
            bblk((TB, 1, S)),                          # additive attention mask
            cblk((1, H)), cblk((1, H)),                # embedding LN gamma/beta
            wblk((H, H3)), wblk((1, H3)),              # wqkv, bqkv
            wblk((N_HEADS, D_HEAD, H)), wblk((1, H)),  # wo (head-major), bo
            wblk((1, H)), wblk((1, H)),                # ln1 gamma/beta
            wblk((H, I)), wblk((1, I)),                # wi, bi
            wblk((I, H)), wblk((1, H)),                # wo2, bo2
            wblk((1, H)), wblk((1, H)),                # ln2 gamma/beta
            cblk((H, OUT_PAD)),                        # padded [linear_start|linear_end|0...]
        ],
        out_specs=bblk((TB, S, OUT_PAD)),
        scratch_shapes=[pltpu.VMEM((TB * S, H), jnp.float32)],   # activation carry
        compiler_params=pltpu.CompilerParams(
            dimension_semantics=("parallel", "arbitrary"),
            # sized for the per-layer working set (weights x double-buffer + activations);
            # at real BERT sizes this is what keeps per-step VMEM bounded on v7x's 64 MiB.
            vmem_limit_bytes=32 * 1024 * 1024),
    )(emb, add_mask,
      pk["emb_ln_g"], pk["emb_ln_b"],
      pk["wqkv"], pk["bqkv"], pk["wo_h"], pk["bo"], pk["ln1_g"], pk["ln1_b"],
      pk["wi"], pk["bi"], pk["wo2"], pk["bo2"], pk["ln2_g"], pk["ln2_b"],
      pk["w_span_pad"])
    return out[..., :2]                                          # [B, S, 2]


# ----------------------------- parameters & forward -----------------------------

def init_params(key):
    ks = iter(jax.random.split(key, 16))

    def nrm(shape, scale=0.02):
        return scale * jax.random.normal(next(ks), shape, jnp.float32)

    L, I = N_LAYERS, INTER
    return {
        "word_emb": nrm((VOCAB, H)),
        "pos_emb": nrm((MAX_POS, H)),
        "type_emb": nrm((TYPE_VOCAB, H)),
        "emb_ln_g": jnp.ones((1, H), jnp.float32),
        "emb_ln_b": jnp.zeros((1, H), jnp.float32),
        "wqkv": nrm((L, H, 3 * H)),
        "bqkv": jnp.zeros((L, 1, 3 * H), jnp.float32),
        "wo": nrm((L, H, H)),
        "bo": jnp.zeros((L, 1, H), jnp.float32),
        "ln1_g": jnp.ones((L, 1, H), jnp.float32),
        "ln1_b": jnp.zeros((L, 1, H), jnp.float32),
        "wi": nrm((L, H, I)),
        "bi": jnp.zeros((L, 1, I), jnp.float32),
        "wo2": nrm((L, I, H)),
        "bo2": jnp.zeros((L, 1, H), jnp.float32),
        "ln2_g": jnp.ones((L, 1, H), jnp.float32),
        "ln2_b": jnp.zeros((L, 1, H), jnp.float32),
        # nn.Parameter(torch.zeros(768)) in the reference; random here so the synthetic
        # test produces non-trivial logits (deterministic via PRNGKey(0)).
        "w_span": nrm((H, 2), 1.0),                    # columns: [linear_start, linear_end]
    }


def pack_params(p):
    """One-time weight prep: bf16 MXU weights, head-major wo, lane-dense span head."""
    pk = dict(p)
    pk["wqkv"] = p["wqkv"].astype(MM_DTYPE)
    pk["wo_h"] = p["wo"].reshape(N_LAYERS, N_HEADS, D_HEAD, H).astype(MM_DTYPE)
    pk["wi"] = p["wi"].astype(MM_DTYPE)
    pk["wo2"] = p["wo2"].astype(MM_DTYPE)
    wspan = jnp.zeros((H, OUT_PAD), jnp.float32).at[:, :2].set(p["w_span"])
    pk["w_span_pad"] = wspan.astype(MM_DTYPE)
    return pk


def my_model_forward(pk, input_ids, attn_masks, token_type):
    """Mirrors MyModel.forward: BERT encoder -> per-position start/end dot products."""
    we = jnp.take(pk["word_emb"], input_ids, axis=0)              # [B, S, H]
    pe = pk["pos_emb"][:S][None, :, :]                            # [1, S, H]
    te = jnp.take(pk["type_emb"], token_type, axis=0)             # [B, S, H]
    emb = (we + pe + te).astype(jnp.float32)                      # [B, S, H]

    # HF-style extended additive attention mask
    add_mask = ((1.0 - attn_masks.astype(jnp.float32)) * -1e9).reshape(B, 1, S)

    logits = bert_qa_pallas(emb, add_mask, pk)                    # [B, S, 2]
    return logits[:, :, 0], logits[:, :, 1]                       # start, end


# ----------------------------- pure-JAX reference -----------------------------

def reference_forward(pk, input_ids, attn_masks, token_type):
    f32 = jnp.float32
    we = jnp.take(pk["word_emb"], input_ids, axis=0)
    pe = pk["pos_emb"][:S][None, :, :]
    te = jnp.take(pk["type_emb"], token_type, axis=0)
    x = (we + pe + te).astype(f32)                                # [B, S, H]
    mask = ((1.0 - attn_masks.astype(f32)) * -1e9)[:, None, None, :]   # [B,1,1,S]

    def ln(v, g, b):
        mu = v.mean(-1, keepdims=True)
        var = ((v - mu) ** 2).mean(-1, keepdims=True)
        return (v - mu) / jnp.sqrt(var + EPS) * g + b

    x = ln(x, pk["emb_ln_g"][0], pk["emb_ln_b"][0])
    scale = 1.0 / math.sqrt(D_HEAD)
    for l in range(N_LAYERS):
        qkv = x @ pk["wqkv"][l].astype(f32) + pk["bqkv"][l]
        q, k, v = jnp.split(qkv, 3, axis=-1)

        def hm(t):                                               # [B,S,H] -> [B,NH,S,DH]
            return t.reshape(B, S, N_HEADS, D_HEAD).transpose(0, 2, 1, 3)

        q, k, v = hm(q), hm(k), hm(v)
        s = jnp.einsum('bnqd,bnkd->bnqk', q, k) * scale + mask
        p = jax.nn.softmax(s, axis=-1)
        ctx = jnp.einsum('bnqk,bnkd->bnqd', p, v)
        ctx = ctx.transpose(0, 2, 1, 3).reshape(B, S, H)
        wo_f = pk["wo_h"][l].astype(f32).reshape(H, H)
        attn = ctx @ wo_f + pk["bo"][l]
        x = ln(attn + x, pk["ln1_g"][l], pk["ln1_b"][l])
        inter = x @ pk["wi"][l].astype(f32) + pk["bi"][l]
        inter = 0.5 * inter * (1.0 + jnp.tanh(
            0.7978845608028654 * (inter + 0.044715 * inter * inter * inter)))
        ffn = inter @ pk["wo2"][l].astype(f32) + pk["bo2"][l]
        x = ln(ffn + x, pk["ln2_g"][l], pk["ln2_b"][l])
    logits = x @ pk["w_span_pad"].astype(f32)[:, :2]
    return logits[..., 0], logits[..., 1]


# ----------------------------------- main -----------------------------------

if __name__ == "__main__":
    key = jax.random.PRNGKey(0)
    k_params, k_ids = jax.random.split(key)

    params = init_params(k_params)
    packed = pack_params(params)

    input_ids = jax.random.randint(k_ids, (B, S), 0, VOCAB, dtype=jnp.int32)
    token_type = jnp.concatenate(
        [jnp.zeros((B, S // 2), jnp.int32), jnp.ones((B, S // 2), jnp.int32)], axis=1)
    attn_masks = jnp.ones((B, S), jnp.float32).at[1, S - 2:].set(0.0)   # pad tail of row 1

    forward = jax.jit(my_model_forward)
    start_logits, end_logits = forward(packed, input_ids, attn_masks, token_type)
    jax.block_until_ready((start_logits, end_logits))

    ref_start, ref_end = reference_forward(packed, input_ids, attn_masks, token_type)

    assert start_logits.shape == (B, S) and end_logits.shape == (B, S)
    assert bool(jnp.all(jnp.isfinite(start_logits))) and bool(jnp.all(jnp.isfinite(end_logits)))
    err = max(float(jnp.max(jnp.abs(start_logits - ref_start))),
              float(jnp.max(jnp.abs(end_logits - ref_end))))
    # loose tolerance: bf16 MXU operands + approx-reciprocal softmax vs. the f32 reference
    assert err < 0.5, f"kernel deviates from pure-JAX reference: max|diff|={err}"
    print("KERNEL_OK")
</pallas_src>

<mosaic_0001>
module attributes {stable_mosaic.version = 11 : i64} {
  func.func @_bert_layer_kernel(%arg0: i32, %arg1: i32, %arg2: memref<1x8x32xf32, #tpu.memory_space<vmem>>, %arg3: memref<1x1x8xf32, #tpu.memory_space<vmem>>, %arg4: memref<1x32xf32, #tpu.memory_space<vmem>>, %arg5: memref<1x32xf32, #tpu.memory_space<vmem>>, %arg6: memref<1x32x96xbf16, #tpu.memory_space<vmem>>, %arg7: memref<1x1x96xf32, #tpu.memory_space<vmem>>, %arg8: memref<1x4x8x32xbf16, #tpu.memory_space<vmem>>, %arg9: memref<1x1x32xf32, #tpu.memory_space<vmem>>, %arg10: memref<1x1x32xf32, #tpu.memory_space<vmem>>, %arg11: memref<1x1x32xf32, #tpu.memory_space<vmem>>, %arg12: memref<1x32x128xbf16, #tpu.memory_space<vmem>>, %arg13: memref<1x1x128xf32, #tpu.memory_space<vmem>>, %arg14: memref<1x128x32xbf16, #tpu.memory_space<vmem>>, %arg15: memref<1x1x32xf32, #tpu.memory_space<vmem>>, %arg16: memref<1x1x32xf32, #tpu.memory_space<vmem>>, %arg17: memref<1x1x32xf32, #tpu.memory_space<vmem>>, %arg18: memref<32x128xbf16, #tpu.memory_space<vmem>>, %arg19: memref<1x8x128xf32, #tpu.memory_space<vmem>>, %arg20: memref<8x32xf32, #tpu.memory_space<vmem>>) attributes {dimension_semantics = [#tpu.dimension_semantics<parallel>, #tpu.dimension_semantics<arbitrary>], iteration_bounds = array<i64: 2, 2>, scalar_prefetch = 0 : i64, scratch_operands = 1 : i64, tpu.core_type = #tpu.core_type<tc>, window_params = [{transform_indices = @transform_0, window_bounds = array<i64: 1, 8, 32>}, {transform_indices = @transform_1, window_bounds = array<i64: 1, 1, 8>}, {pipeline_mode = #tpu.pipeline_mode<synchronous>, transform_indices = @transform_2, window_bounds = array<i64: 1, 32>}, {pipeline_mode = #tpu.pipeline_mode<synchronous>, transform_indices = @transform_3, window_bounds = array<i64: 1, 32>}, {transform_indices = @transform_4, window_bounds = array<i64: 1, 32, 96>}, {transform_indices = @transform_5, window_bounds = array<i64: 1, 1, 96>}, {transform_indices = @transform_6, window_bounds = array<i64: 1, 4, 8, 32>}, {transform_indices = @transform_7, window_bounds = array<i64: 1, 1, 32>}, {transform_indices = @transform_8, window_bounds = array<i64: 1, 1, 32>}, {transform_indices = @transform_9, window_bounds = array<i64: 1, 1, 32>}, {transform_indices = @transform_10, window_bounds = array<i64: 1, 32, 128>}, {transform_indices = @transform_11, window_bounds = array<i64: 1, 1, 128>}, {transform_indices = @transform_12, window_bounds = array<i64: 1, 128, 32>}, {transform_indices = @transform_13, window_bounds = array<i64: 1, 1, 32>}, {transform_indices = @transform_14, window_bounds = array<i64: 1, 1, 32>}, {transform_indices = @transform_15, window_bounds = array<i64: 1, 1, 32>}, {pipeline_mode = #tpu.pipeline_mode<synchronous>, transform_indices = @transform_16, window_bounds = array<i64: 32, 128>}, {transform_indices = @transform_17, window_bounds = array<i64: 1, 8, 128>}]} {
    %c0_i32 = arith.constant 0 : i32
    %0 = arith.cmpi eq, %arg1, %c0_i32 : i32
    %1 = arith.extui %0 : i1 to i32
    %c0_i32_0 = arith.constant 0 : i32
    %2 = arith.cmpi ne, %1, %c0_i32_0 : i32
    scf.if %2 {
      %c0_68 = arith.constant 0 : index
      %c0_69 = arith.constant 0 : index
      %c0_70 = arith.constant 0 : index
      %141 = vector.load %arg2[%c0_68, %c0_69, %c0_70] : memref<1x8x32xf32, #tpu.memory_space<vmem>>, vector<1x8x32xf32>
      %142 = vector.shape_cast %141 : vector<1x8x32xf32> to vector<8x32xf32>
      %c0_71 = arith.constant 0 : index
      %c0_72 = arith.constant 0 : index
      %143 = vector.load %arg4[%c0_71, %c0_72] : memref<1x32xf32, #tpu.memory_space<vmem>>, vector<1x32xf32>
      %c0_73 = arith.constant 0 : index
      %c0_74 = arith.constant 0 : index
      %144 = vector.load %arg5[%c0_73, %c0_74] : memref<1x32xf32, #tpu.memory_space<vmem>>, vector<1x32xf32>
      %cst_75 = arith.constant dense<0.000000e+00> : vector<8xf32>
      %145 = vector.multi_reduction <add>, %142, %cst_75 [1] : vector<8x32xf32> to vector<8xf32>
      %146 = vector.shape_cast %145 : vector<8xf32> to vector<8x1xf32>
      %cst_76 = arith.constant 3.200000e+01 : f32
      %147 = vector.broadcast %cst_76 : f32 to vector<8x1xf32>
      %148 = arith.divf %146, %147 : vector<8x1xf32>
      %149 = vector.broadcast %148 : vector<8x1xf32> to vector<8x32xf32>
      %150 = arith.subf %142, %149 : vector<8x32xf32>
      %151 = arith.mulf %150, %150 : vector<8x32xf32>
      %cst_77 = arith.constant dense<0.000000e+00> : vector<8xf32>
      %152 = vector.multi_reduction <add>, %151, %cst_77 [1] : vector<8x32xf32> to vector<8xf32>
      %153 = vector.shape_cast %152 : vector<8xf32> to vector<8x1xf32>
      %cst_78 = arith.constant 3.200000e+01 : f32
      %154 = vector.broadcast %cst_78 : f32 to vector<8x1xf32>
      %155 = arith.divf %153, %154 : vector<8x1xf32>
      %156 = vector.broadcast %148 : vector<8x1xf32> to vector<8x32xf32>
      %157 = arith.subf %142, %156 : vector<8x32xf32>
      %cst_79 = arith.constant 9.99999996E-13 : f32
      %158 = vector.broadcast %cst_79 : f32 to vector<8x1xf32>
      %159 = arith.addf %155, %158 : vector<8x1xf32>
      %160 = math.rsqrt %159 : vector<8x1xf32>
      %161 = vector.broadcast %160 : vector<8x1xf32> to vector<8x32xf32>
      %162 = arith.mulf %157, %161 : vector<8x32xf32>
      %163 = vector.broadcast %143 : vector<1x32xf32> to vector<8x32xf32>
      %164 = arith.mulf %162, %163 : vector<8x32xf32>
      %165 = vector.broadcast %144 : vector<1x32xf32> to vector<8x32xf32>
      %166 = arith.addf %164, %165 : vector<8x32xf32>
      %c0_80 = arith.constant 0 : index
      %c0_81 = arith.constant 0 : index
      %167 = vector.load %arg20[%c0_80, %c0_81] : memref<8x32xf32, #tpu.memory_space<vmem>>, vector<8x32xf32>
      tpu.vector_store %arg20[%c0_80, %c0_81], %166 {strides = array<i32>} : memref<8x32xf32, #tpu.memory_space<vmem>>, vector<8x32xf32>,
    } else {
    }
    %c0 = arith.constant 0 : index
    %c0_1 = arith.constant 0 : index
    %3 = vector.load %arg20[%c0, %c0_1] : memref<8x32xf32, #tpu.memory_space<vmem>>, vector<8x32xf32>
    %c0_2 = arith.constant 0 : index
    %c0_3 = arith.constant 0 : index
    %c0_4 = arith.constant 0 : index
    %4 = vector.load %arg6[%c0_2, %c0_3, %c0_4] : memref<1x32x96xbf16, #tpu.memory_space<vmem>>, vector<1x32x96xbf16>
    %5 = vector.shape_cast %4 : vector<1x32x96xbf16> to vector<32x96xbf16>
    %6 = arith.truncf %3 : vector<8x32xf32> to vector<8x32xbf16>
    %cst = arith.constant dense<0.000000e+00> : vector<8x96xf32>
    %7 = tpu.matmul %6, %5, %cst {dimension_numbers = #tpu.dot_dimension_numbers<[1], [0], [0], [1], [0, 0, 1, 1], [], []>} : vector<8x32xbf16>, vector<32x96xbf16>, vector<8x96xf32> -> vector<8x96xf32>
    %c0_5 = arith.constant 0 : index
    %c0_6 = arith.constant 0 : index
    %c0_7 = arith.constant 0 : index
    %8 = vector.load %arg7[%c0_5, %c0_6, %c0_7] : memref<1x1x96xf32, #tpu.memory_space<vmem>>, vector<1x1x96xf32>
    %9 = vector.shape_cast %8 : vector<1x1x96xf32> to vector<1x96xf32>
    %10 = vector.broadcast %9 : vector<1x96xf32> to vector<8x96xf32>
    %11 = arith.addf %7, %10 : vector<8x96xf32>
    %12 = vector.extract_strided_slice %11 {offsets = [0, 0], sizes = [8, 32], strides = [1, 1]} : vector<8x96xf32> to vector<8x32xf32>
    %13 = tpu.transpose %12, [1, 0] : vector<8x32xf32> -> vector<32x8xf32>
    %14 = vector.shape_cast %13 : vector<32x8xf32> to vector<4x8x8xf32>
    %15 = tpu.transpose %14, [0, 2, 1] : vector<4x8x8xf32> -> vector<4x8x8xf32>
    %16 = arith.truncf %15 : vector<4x8x8xf32> to vector<4x8x8xbf16>
    %17 = vector.extract_strided_slice %11 {offsets = [0, 32], sizes = [8, 32], strides = [1, 1]} : vector<8x96xf32> to vector<8x32xf32>
    %18 = tpu.transpose %17, [1, 0] : vector<8x32xf32> -> vector<32x8xf32>
    %19 = vector.shape_cast %18 : vector<32x8xf32> to vector<4x8x8xf32>
    %20 = tpu.transpose %19, [0, 2, 1] : vector<4x8x8xf32> -> vector<4x8x8xf32>
    %21 = arith.truncf %20 : vector<4x8x8xf32> to vector<4x8x8xbf16>
    %22 = vector.extract_strided_slice %11 {offsets = [0, 64], sizes = [8, 32], strides = [1, 1]} : vector<8x96xf32> to vector<8x32xf32>
    %23 = tpu.transpose %22, [1, 0] : vector<8x32xf32> -> vector<32x8xf32>
    %24 = vector.shape_cast %23 : vector<32x8xf32> to vector<4x8x8xf32>
    %25 = tpu.transpose %24, [0, 2, 1] : vector<4x8x8xf32> -> vector<4x8x8xf32>
    %26 = arith.truncf %25 : vector<4x8x8xf32> to vector<4x8x8xbf16>
    "tpu.trace_start"() <{level = 10 : i32, message = "nqd,nkd->nqk"}> : () -> ()
    %cst_8 = arith.constant dense<0.000000e+00> : vector<4x8x8xf32>
    %27 = tpu.matmul %16, %21, %cst_8 {dimension_numbers = #tpu.dot_dimension_numbers<[2], [2], [1], [1], [0, 0, 0, 1, 1, 1], [0], [0]>} : vector<4x8x8xbf16>, vector<4x8x8xbf16>, vector<4x8x8xf32> -> vector<4x8x8xf32>
    "tpu.trace_stop"() : () -> ()
    %cst_9 = arith.constant 0.353553385 : f32
    %28 = vector.broadcast %cst_9 : f32 to vector<4x8x8xf32>
    %29 = arith.mulf %27, %28 : vector<4x8x8xf32>
    %c0_10 = arith.constant 0 : index
    %c0_11 = arith.constant 0 : index
    %c0_12 = arith.constant 0 : index
    %30 = vector.load %arg3[%c0_10, %c0_11, %c0_12] : memref<1x1x8xf32, #tpu.memory_space<vmem>>, vector<1x1x8xf32>
    %31 = vector.broadcast %30 : vector<1x1x8xf32> to vector<4x8x8xf32>
    %32 = arith.addf %29, %31 : vector<4x8x8xf32>
    %cst_13 = arith.constant dense<0xFF800000> : vector<4x8xf32>
    %33 = vector.multi_reduction <maximumf>, %32, %cst_13 [2] : vector<4x8x8xf32> to vector<4x8xf32>
    %34 = vector.shape_cast %33 : vector<4x8xf32> to vector<4x8x1xf32>
    %35 = vector.broadcast %34 : vector<4x8x1xf32> to vector<4x8x8xf32>
    %36 = arith.subf %32, %35 : vector<4x8x8xf32>
    %37 = math.exp %36 : vector<4x8x8xf32>
    %cst_14 = arith.constant dense<0.000000e+00> : vector<4x8xf32>
    %38 = vector.multi_reduction <add>, %37, %cst_14 [2] : vector<4x8x8xf32> to vector<4x8xf32>
    %39 = vector.shape_cast %38 : vector<4x8xf32> to vector<4x8x1xf32>
    %40 = tpu.reciprocal %39 {approx = true} : vector<4x8x1xf32> -> vector<4x8x1xf32>
    %41 = vector.broadcast %40 : vector<4x8x1xf32> to vector<4x8x8xf32>
    %42 = arith.mulf %37, %41 : vector<4x8x8xf32>
    %43 = arith.truncf %42 : vector<4x8x8xf32> to vector<4x8x8xbf16>
    "tpu.trace_start"() <{level = 10 : i32, message = "nqk,nkd->nqd"}> : () -> ()
    %cst_15 = arith.constant dense<0.000000e+00> : vector<4x8x8xf32>
    %44 = tpu.matmul %43, %26, %cst_15 {dimension_numbers = #tpu.dot_dimension_numbers<[2], [1], [1], [2], [0, 0, 0, 1, 1, 2], [0], [0]>} : vector<4x8x8xbf16>, vector<4x8x8xbf16>, vector<4x8x8xf32> -> vector<4x8x8xf32>
    "tpu.trace_stop"() : () -> ()
    %45 = arith.truncf %44 : vector<4x8x8xf32> to vector<4x8x8xbf16>
    %c0_16 = arith.constant 0 : index
    %c0_17 = arith.constant 0 : index
    %c0_18 = arith.constant 0 : index
    %c0_19 = arith.constant 0 : index
    %46 = vector.load %arg8[%c0_16, %c0_17, %c0_18, %c0_19] : memref<1x4x8x32xbf16, #tpu.memory_space<vmem>>, vector<1x4x8x32xbf16>
    %47 = vector.shape_cast %46 : vector<1x4x8x32xbf16> to vector<4x8x32xbf16>
    "tpu.trace_start"() <{level = 10 : i32, message = "nqd,ndh->nqh"}> : () -> ()
    %cst_20 = arith.constant dense<0.000000e+00> : vector<4x8x32xf32>
    %48 = tpu.matmul %45, %47, %cst_20 {dimension_numbers = #tpu.dot_dimension_numbers<[2], [1], [1], [2], [0, 0, 0, 1, 1, 2], [0], [0]>} : vector<4x8x8xbf16>, vector<4x8x32xbf16>, vector<4x8x32xf32> -> vector<4x8x32xf32>
    "tpu.trace_stop"() : () -> ()
    %cst_21 = arith.constant dense<0.000000e+00> : vector<8x32xf32>
    %49 = vector.multi_reduction <add>, %48, %cst_21 [0] : vector<4x8x32xf32> to vector<8x32xf32>
    %c0_22 = arith.constant 0 : index
    %c0_23 = arith.constant 0 : index
    %c0_24 = arith.constant 0 : index
    %50 = vector.load %arg9[%c0_22, %c0_23, %c0_24] : memref<1x1x32xf32, #tpu.memory_space<vmem>>, vector<1x1x32xf32>
    %51 = vector.shape_cast %50 : vector<1x1x32xf32> to vector<1x32xf32>
    %52 = vector.broadcast %51 : vector<1x32xf32> to vector<8x32xf32>
    %53 = arith.addf %49, %52 : vector<8x32xf32>
    %54 = arith.addf %53, %3 : vector<8x32xf32>
    %c0_25 = arith.constant 0 : index
    %c0_26 = arith.constant 0 : index
    %c0_27 = arith.constant 0 : index
    %55 = vector.load %arg10[%c0_25, %c0_26, %c0_27] : memref<1x1x32xf32, #tpu.memory_space<vmem>>, vector<1x1x32xf32>
    %56 = vector.shape_cast %55 : vector<1x1x32xf32> to vector<1x32xf32>
    %c0_28 = arith.constant 0 : index
    %c0_29 = arith.constant 0 : index
    %c0_30 = arith.constant 0 : index
    %57 = vector.load %arg11[%c0_28, %c0_29, %c0_30] : memref<1x1x32xf32, #tpu.memory_space<vmem>>, vector<1x1x32xf32>
    %58 = vector.shape_cast %57 : vector<1x1x32xf32> to vector<1x32xf32>
    %cst_31 = arith.constant dense<0.000000e+00> : vector<8xf32>
    %59 = vector.multi_reduction <add>, %54, %cst_31 [1] : vector<8x32xf32> to vector<8xf32>
    %60 = vector.shape_cast %59 : vector<8xf32> to vector<8x1xf32>
    %cst_32 = arith.constant 3.200000e+01 : f32
    %61 = vector.broadcast %cst_32 : f32 to vector<8x1xf32>
    %62 = arith.divf %60, %61 : vector<8x1xf32>
    %63 = vector.broadcast %62 : vector<8x1xf32> to vector<8x32xf32>
    %64 = arith.subf %54, %63 : vector<8x32xf32>
    %65 = arith.mulf %64, %64 : vector<8x32xf32>
    %cst_33 = arith.constant dense<0.000000e+00> : vector<8xf32>
    %66 = vector.multi_reduction <add>, %65, %cst_33 [1] : vector<8x32xf32> to vector<8xf32>
    %67 = vector.shape_cast %66 : vector<8xf32> to vector<8x1xf32>
    %cst_34 = arith.constant 3.200000e+01 : f32
    %68 = vector.broadcast %cst_34 : f32 to vector<8x1xf32>
    %69 = arith.divf %67, %68 : vector<8x1xf32>
    %70 = vector.broadcast %62 : vector<8x1xf32> to vector<8x32xf32>
    %71 = arith.subf %54, %70 : vector<8x32xf32>
    %cst_35 = arith.constant 9.99999996E-13 : f32
    %72 = vector.broadcast %cst_35 : f32 to vector<8x1xf32>
    %73 = arith.addf %69, %72 : vector<8x1xf32>
    %74 = math.rsqrt %73 : vector<8x1xf32>
    %75 = vector.broadcast %74 : vector<8x1xf32> to vector<8x32xf32>
    %76 = arith.mulf %71, %75 : vector<8x32xf32>
    %77 = vector.broadcast %56 : vector<1x32xf32> to vector<8x32xf32>
    %78 = arith.mulf %76, %77 : vector<8x32xf32>
    %79 = vector.broadcast %58 : vector<1x32xf32> to vector<8x32xf32>
    %80 = arith.addf %78, %79 : vector<8x32xf32>
    %c0_36 = arith.constant 0 : index
    %c0_37 = arith.constant 0 : index
    %c0_38 = arith.constant 0 : index
    %81 = vector.load %arg12[%c0_36, %c0_37, %c0_38] : memref<1x32x128xbf16, #tpu.memory_space<vmem>>, vector<1x32x128xbf16>
    %82 = vector.shape_cast %81 : vector<1x32x128xbf16> to vector<32x128xbf16>
    %83 = arith.truncf %80 : vector<8x32xf32> to vector<8x32xbf16>
    %cst_39 = arith.constant dense<0.000000e+00> : vector<8x128xf32>
    %84 = tpu.matmul %83, %82, %cst_39 {dimension_numbers = #tpu.dot_dimension_numbers<[1], [0], [0], [1], [0, 0, 1, 1], [], []>} : vector<8x32xbf16>, vector<32x128xbf16>, vector<8x128xf32> -> vector<8x128xf32>
    %c0_40 = arith.constant 0 : index
    %c0_41 = arith.constant 0 : index
    %c0_42 = arith.constant 0 : index
    %85 = vector.load %arg13[%c0_40, %c0_41, %c0_42] : memref<1x1x128xf32, #tpu.memory_space<vmem>>, vector<1x1x128xf32>
    %86 = vector.shape_cast %85 : vector<1x1x128xf32> to vector<1x128xf32>
    %87 = vector.broadcast %86 : vector<1x128xf32> to vector<8x128xf32>
    %88 = arith.addf %84, %87 : vector<8x128xf32>
    %cst_43 = arith.constant 5.000000e-01 : f32
    %89 = vector.broadcast %cst_43 : f32 to vector<8x128xf32>
    %90 = arith.mulf %89, %88 : vector<8x128xf32>
    %cst_44 = arith.constant 4.471500e-02 : f32
    %91 = vector.broadcast %cst_44 : f32 to vector<8x128xf32>
    %92 = arith.mulf %91, %88 : vector<8x128xf32>
    %93 = arith.mulf %92, %88 : vector<8x128xf32>
    %94 = arith.mulf %93, %88 : vector<8x128xf32>
    %95 = arith.addf %88, %94 : vector<8x128xf32>
    %cst_45 = arith.constant 0.797884583 : f32
    %96 = vector.broadcast %cst_45 : f32 to vector<8x128xf32>
    %97 = arith.mulf %96, %95 : vector<8x128xf32>
    %98 = math.tanh %97 : vector<8x128xf32>
    %cst_46 = arith.constant 1.000000e+00 : f32
    %99 = vector.broadcast %cst_46 : f32 to vector<8x128xf32>
    %100 = arith.addf %99, %98 : vector<8x128xf32>
    %101 = arith.mulf %90, %100 : vector<8x128xf32>
    %c0_47 = arith.constant 0 : index
    %c0_48 = arith.constant 0 : index
    %c0_49 = arith.constant 0 : index
    %102 = vector.load %arg14[%c0_47, %c0_48, %c0_49] : memref<1x128x32xbf16, #tpu.memory_space<vmem>>, vector<1x128x32xbf16>
    %103 = vector.shape_cast %102 : vector<1x128x32xbf16> to vector<128x32xbf16>
    %104 = arith.truncf %101 : vector<8x128xf32> to vector<8x128xbf16>
    %cst_50 = arith.constant dense<0.000000e+00> : vector<8x32xf32>
    %105 = tpu.matmul %104, %103, %cst_50 {dimension_numbers = #tpu.dot_dimension_numbers<[1], [0], [0], [1], [0, 0, 1, 1], [], []>} : vector<8x128xbf16>, vector<128x32xbf16>, vector<8x32xf32> -> vector<8x32xf32>
    %c0_51 = arith.constant 0 : index
    %c0_52 = arith.constant 0 : index
    %c0_53 = arith.constant 0 : index
    %106 = vector.load %arg15[%c0_51, %c0_52, %c0_53] : memref<1x1x32xf32, #tpu.memory_space<vmem>>, vector<1x1x32xf32>
    %107 = vector.shape_cast %106 : vector<1x1x32xf32> to vector<1x32xf32>
    %108 = vector.broadcast %107 : vector<1x32xf32> to vector<8x32xf32>
    %109 = arith.addf %105, %108 : vector<8x32xf32>
    %110 = arith.addf %109, %80 : vector<8x32xf32>
    %c0_54 = arith.constant 0 : index
    %c0_55 = arith.constant 0 : index
    %c0_56 = arith.constant 0 : index
    %111 = vector.load %arg16[%c0_54, %c0_55, %c0_56] : memref<1x1x32xf32, #tpu.memory_space<vmem>>, vector<1x1x32xf32>
    %112 = vector.shape_cast %111 : vector<1x1x32xf32> to vector<1x32xf32>
    %c0_57 = arith.constant 0 : index
    %c0_58 = arith.constant 0 : index
    %c0_59 = arith.constant 0 : index
    %113 = vector.load %arg17[%c0_57, %c0_58, %c0_59] : memref<1x1x32xf32, #tpu.memory_space<vmem>>, vector<1x1x32xf32>
    %114 = vector.shape_cast %113 : vector<1x1x32xf32> to vector<1x32xf32>
    %cst_60 = arith.constant dense<0.000000e+00> : vector<8xf32>
    %115 = vector.multi_reduction <add>, %110, %cst_60 [1] : vector<8x32xf32> to vector<8xf32>
    %116 = vector.shape_cast %115 : vector<8xf32> to vector<8x1xf32>
    %cst_61 = arith.constant 3.200000e+01 : f32
    %117 = vector.broadcast %cst_61 : f32 to vector<8x1xf32>
    %118 = arith.divf %116, %117 : vector<8x1xf32>
    %119 = vector.broadcast %118 : vector<8x1xf32> to vector<8x32xf32>
    %120 = arith.subf %110, %119 : vector<8x32xf32>
    %121 = arith.mulf %120, %120 : vector<8x32xf32>
    %cst_62 = arith.constant dense<0.000000e+00> : vector<8xf32>
    %122 = vector.multi_reduction <add>, %121, %cst_62 [1] : vector<8x32xf32> to vector<8xf32>
    %123 = vector.shape_cast %122 : vector<8xf32> to vector<8x1xf32>
    %cst_63 = arith.constant 3.200000e+01 : f32
    %124 = vector.broadcast %cst_63 : f32 to vector<8x1xf32>
    %125 = arith.divf %123, %124 : vector<8x1xf32>
    %126 = vector.broadcast %118 : vector<8x1xf32> to vector<8x32xf32>
    %127 = arith.subf %110, %126 : vector<8x32xf32>
    %cst_64 = arith.constant 9.99999996E-13 : f32
    %128 = vector.broadcast %cst_64 : f32 to vector<8x1xf32>
    %129 = arith.addf %125, %128 : vector<8x1xf32>
    %130 = math.rsqrt %129 : vector<8x1xf32>
    %131 = vector.broadcast %130 : vector<8x1xf32> to vector<8x32xf32>
    %132 = arith.mulf %127, %131 : vector<8x32xf32>
    %133 = vector.broadcast %112 : vector<1x32xf32> to vector<8x32xf32>
    %134 = arith.mulf %132, %133 : vector<8x32xf32>
    %135 = vector.broadcast %114 : vector<1x32xf32> to vector<8x32xf32>
    %136 = arith.addf %134, %135 : vector<8x32xf32>
    %c0_65 = arith.constant 0 : index
    %c0_66 = arith.constant 0 : index
    %137 = vector.load %arg20[%c0_65, %c0_66] : memref<8x32xf32, #tpu.memory_space<vmem>>, vector<8x32xf32>
    tpu.vector_store %arg20[%c0_65, %c0_66], %136 {strides = array<i32>} : memref<8x32xf32, #tpu.memory_space<vmem>>, vector<8x32xf32>,
    %c1_i32 = arith.constant 1 : i32
    %138 = arith.cmpi eq, %arg1, %c1_i32 : i32
    %139 = arith.extui %138 : i1 to i32
    %c0_i32_67 = arith.constant 0 : i32
    %140 = arith.cmpi ne, %139, %c0_i32_67 : i32
    scf.if %140 {
      %c0_68 = arith.constant 0 : index
      %c0_69 = arith.constant 0 : index
      %141 = vector.load %arg18[%c0_68, %c0_69] : memref<32x128xbf16, #tpu.memory_space<vmem>>, vector<32x128xbf16>
      %142 = arith.truncf %136 : vector<8x32xf32> to vector<8x32xbf16>
      %cst_70 = arith.constant dense<0.000000e+00> : vector<8x128xf32>
      %143 = tpu.matmul %142, %141, %cst_70 {dimension_numbers = #tpu.dot_dimension_numbers<[1], [0], [0], [1], [0, 0, 1, 1], [], []>} : vector<8x32xbf16>, vector<32x128xbf16>, vector<8x128xf32> -> vector<8x128xf32>
      %144 = vector.shape_cast %143 : vector<8x128xf32> to vector<1x8x128xf32>
      %c0_71 = arith.constant 0 : index
      %c0_72 = arith.constant 0 : index
      %c0_73 = arith.constant 0 : index
      %145 = vector.load %arg19[%c0_71, %c0_72, %c0_73] : memref<1x8x128xf32, #tpu.memory_space<vmem>>, vector<1x8x128xf32>
      tpu.vector_store %arg19[%c0_71, %c0_72, %c0_73], %144 {strides = array<i32>} : memref<1x8x128xf32, #tpu.memory_space<vmem>>, vector<1x8x128xf32>,
    } else {
    }
    return
  }
  func.func @transform_0(%arg0: i32, %arg1: i32) -> (i32, i32, i32) {
    %c0_i32 = arith.constant 0 : i32
    %c0_i32_0 = arith.constant 0 : i32
    %c0_i32_1 = arith.constant 0 : i32
    return %arg0, %c0_i32, %c0_i32_0 : i32, i32, i32
  }
  func.func @transform_1(%arg0: i32, %arg1: i32) -> (i32, i32, i32) {
    %c0_i32 = arith.constant 0 : i32
    %c0_i32_0 = arith.constant 0 : i32
    %c0_i32_1 = arith.constant 0 : i32
    return %arg0, %c0_i32, %c0_i32_0 : i32, i32, i32
  }
  func.func @transform_2(%arg0: i32, %arg1: i32) -> (i32, i32) {
    %c0_i32 = arith.constant 0 : i32
    %c0_i32_0 = arith.constant 0 : i32
    %c0_i32_1 = arith.constant 0 : i32
    return %c0_i32, %c0_i32_0 : i32, i32
  }
  func.func @transform_3(%arg0: i32, %arg1: i32) -> (i32, i32) {
    %c0_i32 = arith.constant 0 : i32
    %c0_i32_0 = arith.constant 0 : i32
    %c0_i32_1 = arith.constant 0 : i32
    return %c0_i32, %c0_i32_0 : i32, i32
  }
  func.func @transform_4(%arg0: i32, %arg1: i32) -> (i32, i32, i32) {
    %c0_i32 = arith.constant 0 : i32
    %c0_i32_0 = arith.constant 0 : i32
    %c0_i32_1 = arith.constant 0 : i32
    return %arg1, %c0_i32, %c0_i32_0 : i32, i32, i32
  }
  func.func @transform_5(%arg0: i32, %arg1: i32) -> (i32, i32, i32) {
    %c0_i32 = arith.constant 0 : i32
    %c0_i32_0 = arith.constant 0 : i32
    %c0_i32_1 = arith.constant 0 : i32
    return %arg1, %c0_i32, %c0_i32_0 : i32, i32, i32
  }
  func.func @transform_6(%arg0: i32, %arg1: i32) -> (i32, i32, i32, i32) {
    %c0_i32 = arith.constant 0 : i32
    %c0_i32_0 = arith.constant 0 : i32
    %c0_i32_1 = arith.constant 0 : i32
    %c0_i32_2 = arith.constant 0 : i32
    return %arg1, %c0_i32, %c0_i32_0, %c0_i32_1 : i32, i32, i32, i32
  }
  func.func @transform_7(%arg0: i32, %arg1: i32) -> (i32, i32, i32) {
    %c0_i32 = arith.constant 0 : i32
    %c0_i32_0 = arith.constant 0 : i32
    %c0_i32_1 = arith.constant 0 : i32
    return %arg1, %c0_i32, %c0_i32_0 : i32, i32, i32
  }
  func.func @transform_8(%arg0: i32, %arg1: i32) -> (i32, i32, i32) {
    %c0_i32 = arith.constant 0 : i32
    %c0_i32_0 = arith.constant 0 : i32
    %c0_i32_1 = arith.constant 0 : i32
    return %arg1, %c0_i32, %c0_i32_0 : i32, i32, i32
  }
  func.func @transform_9(%arg0: i32, %arg1: i32) -> (i32, i32, i32) {
    %c0_i32 = arith.constant 0 : i32
    %c0_i32_0 = arith.constant 0 : i32
    %c0_i32_1 = arith.constant 0 : i32
    return %arg1, %c0_i32, %c0_i32_0 : i32, i32, i32
  }
  func.func @transform_10(%arg0: i32, %arg1: i32) -> (i32, i32, i32) {
    %c0_i32 = arith.constant 0 : i32
    %c0_i32_0 = arith.constant 0 : i32
    %c0_i32_1 = arith.constant 0 : i32
    return %arg1, %c0_i32, %c0_i32_0 : i32, i32, i32
  }
  func.func @transform_11(%arg0: i32, %arg1: i32) -> (i32, i32, i32) {
    %c0_i32 = arith.constant 0 : i32
    %c0_i32_0 = arith.constant 0 : i32
    %c0_i32_1 = arith.constant 0 : i32
    return %arg1, %c0_i32, %c0_i32_0 : i32, i32, i32
  }
  func.func @transform_12(%arg0: i32, %arg1: i32) -> (i32, i32, i32) {
    %c0_i32 = arith.constant 0 : i32
    %c0_i32_0 = arith.constant 0 : i32
    %c0_i32_1 = arith.constant 0 : i32
    return %arg1, %c0_i32, %c0_i32_0 : i32, i32, i32
  }
  func.func @transform_13(%arg0: i32, %arg1: i32) -> (i32, i32, i32) {
    %c0_i32 = arith.constant 0 : i32
    %c0_i32_0 = arith.constant 0 : i32
    %c0_i32_1 = arith.constant 0 : i32
    return %arg1, %c0_i32, %c0_i32_0 : i32, i32, i32
  }
  func.func @transform_14(%arg0: i32, %arg1: i32) -> (i32, i32, i32) {
    %c0_i32 = arith.constant 0 : i32
    %c0_i32_0 = arith.constant 0 : i32
    %c0_i32_1 = arith.constant 0 : i32
    return %arg1, %c0_i32, %c0_i32_0 : i32, i32, i32
  }
  func.func @transform_15(%arg0: i32, %arg1: i32) -> (i32, i32, i32) {
    %c0_i32 = arith.constant 0 : i32
    %c0_i32_0 = arith.constant 0 : i32
    %c0_i32_1 = arith.constant 0 : i32
    return %arg1, %c0_i32, %c0_i32_0 : i32, i32, i32
  }
  func.func @transform_16(%arg0: i32, %arg1: i32) -> (i32, i32) {
    %c0_i32 = arith.constant 0 : i32
    %c0_i32_0 = arith.constant 0 : i32
    %c0_i32_1 = arith.constant 0 : i32
    return %c0_i32, %c0_i32_0 : i32, i32
  }
  func.func @transform_17(%arg0: i32, %arg1: i32) -> (i32, i32, i32) {
    %c0_i32 = arith.constant 0 : i32
    %c0_i32_0 = arith.constant 0 : i32
    %c0_i32_1 = arith.constant 0 : i32
    return %arg0, %c0_i32, %c0_i32_0 : i32, i32, i32
  }
}

</mosaic_0001>

<bundles_post_ra>
// kernel: my_model_forward.1
= control target key start
LH: loop header
LB: loop body
LE: loop exit
PB: predicated region body
PF: predicated region fallthrough
CT: control target
= control target key end

     0   :  { %s2445_s24 = smov 0   ;;  %s2447_s25 = smov 0   ;;  %s2704_s0 = inlined_call_operand.vmem [shape: f32[2,8,32], index: 0, kind: input, shape index: {}]   ;;  %s2705_s1 = inlined_call_operand.vmem [shape: f32[2,1,8], index: 1, kind: input, shape index: {}]   ;;  %s2706_s2 = inlined_call_operand.vmem [shape: f32[1,32], index: 2, kind: input, shape index: {}]   ;;  %s2707_s3 = inlined_call_operand.vmem [shape: f32[1,32], index: 3, kind: input, shape index: {}]   ;;  %s2708_s4 = inlined_call_operand.vmem [shape: bf16[2,32,96], index: 4, kind: input, shape index: {}]   ;;  %s2709_s5 = inlined_call_operand.vmem [shape: f32[2,1,96], index: 5, kind: input, shape index: {}]   ;;  %s2710_s6 = inlined_call_operand.vmem [shape: bf16[2,4,8,32], index: 6, kind: input, shape index: {}]   ;;  %s2711_s7 = inlined_call_operand.vmem [shape: f32[2,1,32], index: 7, kind: input, shape index: {}]   ;;  %s2712_s8 = inlined_call_operand.vmem [shape: f32[2,1,32], index: 8, kind: input, shape index: {}]   ;;  %s2713_s9 = inlined_call_operand.vmem [shape: f32[2,1,32], index: 9, kind: input, shape index: {}]   ;;  %s2714_s10 = inlined_call_operand.vmem [shape: bf16[2,32,128], index: 10, kind: input, shape index: {}]   ;;  %s2715_s11 = inlined_call_operand.vmem [shape: f32[2,1,128], index: 11, kind: input, shape index: {}]   ;;  %s2716_s12 = inlined_call_operand.vmem [shape: bf16[2,128,32], index: 12, kind: input, shape index: {}]   ;;  %s2717_s13 = inlined_call_operand.vmem [shape: f32[2,1,32], index: 13, kind: input, shape index: {}]   ;;  %s2718_s14 = inlined_call_operand.vmem [shape: f32[2,1,32], index: 14, kind: input, shape index: {}]   ;;  %s2719_s15 = inlined_call_operand.vmem [shape: f32[2,1,32], index: 15, kind: input, shape index: {}]   ;;  %s2720_s16 = inlined_call_operand.vmem [shape: bf16[32,128], index: 16, kind: input, shape index: {}]   ;;  %s2721_s17 = inlined_call_operand.vmem [shape: f32[2,8,128], index: 17, kind: output, shape index: {}]  }
   0x1   :  { %2728 = sst [smem:[#allocation10_spill]] %s2704_s0  ;;  %s2449_s26 = smov 0  }
   0x2   :  { %2729 = sst [smem:[#allocation11_spill]] %s2705_s1  ;;  %s2451_s27 = smov 0  }
   0x3   :  { %2730 = sst [smem:[#allocation12_spill]] %s2706_s2  ;;  %s2453_s28 = smov 0  }
   0x4   :  { %2731 = sst [smem:[#allocation13_spill]] %s2707_s3 }
   0x5   :  { %2732 = sst [smem:[#allocation14_spill]] %s2708_s4 }
   0x6   :  { %2733 = sst [smem:[#allocation15_spill]] %s2710_s6 }
   0x7   :  { %2734 = sst [smem:[#allocation16_spill]] %s2714_s10 }
   0x8   :  { %2735 = sst [smem:[#allocation17_spill]] %s2715_s11 }
   0x9   :  { %2736 = sst [smem:[#allocation18_spill]] %s2719_s15 }
   0xa   :  { %2737 = sst [smem:[#allocation19_spill]] %s2720_s16 }
   0xb   :  { %2738 = sst [smem:[#allocation20_spill]] %s2721_s17 }
   0xc LB: > { %2739 = sst [smem:[#allocation3_spill]] %s2333_s24  ;;  %s36_s29 = sadd.s32 1, %s2341_s26  ;;  %s2349_s28 = sphi %s2453_s28, %s27_s28   ;;  %s2345_s27 = sphi %s2451_s27, %s2773_s27   ;;  %s2341_s26 = sphi %s2449_s26, %s2772_s26   ;;  %s2337_s25 = sphi %s2447_s25, %s2771_s25   ;;  %s2333_s24 = sphi %s2445_s24, %s2770_s24  }
   0xd   : > { %2740 = sst [smem:[#allocation4_spill]] %s2341_s26  ;;  %s39_s0 = sadd.s32 1, %s2345_s27 }
   0xe   : > { %2741 = sst [smem:[#allocation5_spill]] %s2345_s27  ;;  %p37_p0 = scmp.ge.s32.totalorder %s36_s29, 2 }
   0xf   : > { %2742 = sst [smem:[#allocation6_spill]] %s2349_s28  ;;  %p2094_p1 = scmp.ge.s32.totalorder %s2349_s28, 1 }
  0x10   : > { %p610_p2 = scmp.lt.s32.totalorder %s2349_s28, 5  ;;  %s2775_s29 = smov (%p37_p0, %s36_s29), 0 }
  0x11   : > { %2743 = sst [smem:[#allocation7_spill]] %s2775_s29  ;;  %s2777_s0 = smov (!%p37_p0, %s39_s0), %s2345_s27 }
  0x12   : > { %p611_p3 = pnand %p2094_p1, %p610_p2  ;;  %p41_p4 = scmp.ge.s32.totalorder %s2777_s0, 2 }
  0x14   : > { %s2779_s0 = smov (%p41_p4, %s2777_s0), 0  ;;  %614 = sbr.rel (%p611_p3) target bundleno = 2800 (0xaf0), region = 88 }
  0x15   : > { %2744 = sst [smem:[#allocation8_spill]] %s2779_s0 }
  0x19   : > { %p707_p5 = scmp.lt.s32.totalorder %s2337_s25, 1  ;;  %p714_p6 = scmp.lt.s32.totalorder %s2333_s24, 1 }
  0x1a   : > { %s2747_s0 = sld [smem:[#allocation10_spill]] }
  0x1b   : > { %s2781_s25 = smov (!%p707_p5, %s2337_s25), 1  ;;  %s2748_s4 = sld [smem:[#allocation14_spill]] }
  0x1c   : > { %2745 = sst [smem:[#allocation9_spill]] %s2781_s25  ;;  %s2095_s18 = sshll.u32 %s2781_s25, 3 }
  0x1d   : > { %s2481_s30 = scalar_select %p714_p6, %s2333_s24, 1 }
  0x1e   : > { %s2749_s6 = sld [smem:[#allocation15_spill]] }
  0x1f   : > { %s2180_s27 = sshll.u32 %s2481_s30, 4  ;;  %s2750_s10 = sld [smem:[#allocation16_spill]] }
  0x20   : > { %s710_s29 = scalar_lea.vmem %s2747_s0, %s2095_s18  ;;  %s751_s22 = scalar_lea.vmem %s2717_s13, %s2481_s30 }
  0x21   : > { %s2495_s16 = scalar_lea.vmem %s2748_s4, %s2180_s27  ;;  %s754_s25 = scalar_lea.vmem %s2718_s14, %s2481_s30 }
  0x22   : > { %s2752_s4 = sld [smem:[#allocation18_spill]] }
  0x23   : > { %s2753_s24 = sld [smem:[#allocation20_spill]] }
  0x24   : > { %s2504_s19 = scalar_lea.vmem %s2749_s6, %s2180_s27  ;;  %s2183_s6 = sshll.u32 %s2481_s30, 6 }
  0x25   : > { %s2521_s3 = scalar_lea.vmem %s2750_s10, %s2180_s27  ;;  %s2535_s21 = scalar_lea.vmem %s2716_s12, %s2183_s6 }
  0x26   : > { %s2754_s1 = sld [smem:[#allocation3_spill]] }
  0x28   : > { %s757_s10 = scalar_lea.vmem %s2752_s4, %s2481_s30 }
  0x29   : > { %s2548_s11 = scalar_lea.vmem %s2753_s24, %s2095_s18 }
  0x2c   : > { %p2105_p7 = scmp.ne.s32.totalorder %s2754_s1, 0 }
  0x2d   : > { %s2755_s24 = sld [smem:[#allocation12_spill]] (!%p2105_p7) }
  0x2e   : > { %766 = sbr.rel (%p2105_p7) target bundleno = 321 (0x141), region = 92  ;;  %s2756_s20 = sld [smem:[#allocation13_spill]] (!%p2105_p7) }
  0x33   : > { %v767_v0 = vld [vmem:[%s710_s29] sm:$0xff]  ;;  %vm770_vm0 = vcmask 261120   ;;  %v2351_v2 = vmov 32.0  }
  0x34   : > { %v771_v1 = vsel %vm770_vm0, %v767_v0, 0.0  ;;  %2245 = vrcp.f32 %v2351_v2  ;;  %v2243_v23 = vld [vmem:[%s2755_s24] ss:$0 sm:$0xff] }
  0x35   : > { %772 = vadd.xlane.f32.xlu0 %v771_v1  ;;  %v2244_v25 = vld [vmem:[%s2756_s20] ss:$0 sm:$0xff] }
  0x3a   : > { %v2246_v3 = vpop.eup %2245 }
  0x3b   : > { %v775_v4 = vmul.f32 32.0, %v2246_v3  ;;  %vm779_vm1 = vweird.f32 %v2246_v3 }
  0x3d   : > { %v776_v5 = vsub.f32 1.0, %v775_v4 }
  0x3f   : > { %v777_v6 = vmul.f32 %v2246_v3, %v776_v5 }
  0x41   : > { %v778_v7 = vadd.f32 %v2246_v3, %v777_v6 }
  0x43   : > { %v780_v8 = vsel %vm779_vm1, %v2246_v3, %v778_v7 }
  0xa8   : > { %v773_v9 = vpop.xlane.xlu0 %772 }
  0xa9   : > { %v781_v10 = vmul.f32 %v780_v8, %v773_v9 }
  0xab   : > { %v782_v11 = vsub.f32 %v767_v0, %v781_v10 }
  0xad   : > { %v783_v12 = vmul.f32 %v782_v11, %v782_v11 }
  0xaf   : > { %v784_v13 = vsel %vm770_vm0, %v783_v12, 0.0 }
  0xb0   : > { %785 = vadd.xlane.f32.xlu0 %v784_v13 }
 0x123   : > { %v786_v14 = vpop.xlane.xlu0 %785 }
 0x124   : > { %v787_v15 = vmul.f32 %v786_v14, %v780_v8 }
 0x126   : > { %v788_v16 = vadd.f32 1e-12, %v787_v15 }
 0x128   : > { %2247 = vrsqrt.f32 %v788_v16  ;;  %vm795_vm3 = vweird.f32 %v788_v16 }
 0x12e   : > { %v2248_v17 = vpop.eup %2247 }
 0x12f   : > { %v790_v18 = vmul.f32 %v2248_v17, %v788_v16  ;;  %vm796_vm2 = vweird.f32 %v2248_v17 }
 0x130   : > { %vm797_vm4 = vmor %vm795_vm3, %vm796_vm2 }
 0x131   : > { %v791_v19 = vmul.f32 %v2248_v17, %v790_v18 }
 0x133   : > { %v792_v20 = vmul.f32 0.5, %v791_v19 }
 0x135   : > { %v793_v21 = vsub.f32 1.5, %v792_v20 }
 0x137   : > { %v794_v22 = vmul.f32 %v2248_v17, %v793_v21 }
 0x139   : > { %v798_v24 = vsel %vm797_vm4, %v2248_v17, %v794_v22 }
 0x13a   : > { %v799_v26 = vmul.f32 %v798_v24, %v782_v11 }
 0x13c   : > { %v803_v27 = vmul.f32 %v2243_v23, %v799_v26 }
 0x13e   : > { %v807_v28 = vadd.f32 %v2244_v25, %v803_v27 }
 0x140   : > { %808 = vst.msk [vmem:[#allocation2] sm:$0xff] %vm770_vm0, %v807_v28 }
 0x141 PF: > { %v2185_v29 = vld [vmem:[%s2495_s16 + $0x8] sm:$0xff]  ;;  %v2184_v30 = vld [vmem:[%s2495_s16] sm:$0xff]  ;;  %vm831_vm5 = vcmask 261120   ;;  %s2757_s26 = scalar_lea.vmem %s2709_s5, %s2481_s30  ;;  %s2352_s28 = smov 96   ;;  %vm1347_vm6 = vcmask 64512   ;;  %vm1487_vm7 = vcmask 1043456  }
 0x142   : > { %841 = vmatpush.bf16.msra.mxu0 %v2185_v29  ;;  %v2278_v33 = vld [vmem:[%s2757_s26] ss:$0 sm:$0xff]  ;;  %s2758_s16 = sld [smem:[#allocation9_spill]]  ;;  %s2353_s1 = smov 64  }
 0x143   : > { %s2759_s15 = sld [smem:[#allocation11_spill]]  ;;  %s2761_s6 = scalar_lea.vmem %s2711_s7, %s2481_s30 }
 0x144   : > { %s2762_s29 = scalar_lea.vmem %s2712_s8, %s2481_s30  ;;  %s2763_s0 = scalar_lea.vmem %s2713_s9, %s2481_s30 }
 0x146   : > { %842 = vmatpush.bf16.msra.mxu0 %v2184_v30 }
 0x147   : > { %v2562_v31 = vld [vmem:[#allocation2] sm:$0xff] }
 0x148   : > { %v814_v32 = vpack.c.bf16 %v2562_v31, %v2562_v31 }
 0x149   : > { %s2760_s17 = scalar_lea.vmem %s2759_s15, %s2758_s16 }
 0x14a   : > { %2114 = vmatmul.msk.bf16.vlgmr.msra.gmra.mxu0 %vm831_vm5, %v814_v32  ;;  %v2279_v7 = vld [vmem:[%s2760_s17] ss:$0 sm:$0xff] }
 0x1c7   : > { %v844_v34 = vpop.f32.mrf.mxu0 }
 0x1c8   : > { %v2572_v35 = vadd.f32 %v2278_v33, %v844_v34 }
 0x1ca   : > { %1013 = vrot.lane.b32.xlu0 %v2572_v35, %s2352_s28  ;;  %s2764_s28 = sld [smem:[#allocation17_spill]] }
 0x1cf   : > { %v846_v36 = vpop.f32.mrf.mxu0 }
 0x1d0   : > { %s2765_s16 = scalar_lea.vmem %s2764_s28, %s2481_s30 }
 0x23c   : > { %v1014_v37 = vpop.permute.xlu0 %1013 }
 0x23d   : > { %v2249_v38 = vpack.i.bf16 %v2572_v35, %v1014_v37 }
 0x23f   : > { %2250 = vxpose.xlu0.b32.start.end [1/1] (short) (narrow) %v2249_v38, 32 }
 0x2e3   : > { %v2251_v39 = vpop.trf.xlu0 }
 0x2e4   : > { %v2252_v47 = vunpack.i.l.bf16 %v2251_v39  ;;  %v2255_v49 = vunpack.i.h.bf16 %v2251_v39 }
 0x2eb   : > { %v2256_v40 = vpop.trf.xlu0 }
 0x2ec   : > { %v2257_v41 = vunpack.i.l.bf16 %v2256_v40  ;;  %v2260_v44 = vunpack.i.h.bf16 %v2256_v40 }
 0x2ee   : > { %1080 = vxpose.xlu1.b32.start.end [1/1] (short) (narrow) %v2257_v41, 8 }
 0x2f3   : > { %v2261_v42 = vpop.trf.xlu0 }
 0x2f4   : > { %v2262_v43 = vunpack.i.l.bf16 %v2261_v42  ;;  %v2265_v46 = vunpack.i.h.bf16 %v2261_v42 }
 0x2f6   : > { %1112 = vxpose.xlu2.b32.start.end [1/1] (short) (narrow) %v2262_v43, 8  ;;  %912 = vxpose.xlu1.b32.start.end [1/1] (short) (narrow) %v2260_v44, 8 }
 0x2fb   : > { %v2266_v45 = vpop.trf.xlu0 }
 0x2fc   : > { %v2267_v48 = vunpack.i.l.bf16 %v2266_v45  ;;  %v2270_v50 = vunpack.i.h.bf16 %v2266_v45 }
 0x2fe   : > { %944 = vxpose.xlu2.b32.start.end [1/1] (short) (narrow) %v2265_v46, 8  ;;  %1048 = vxpose.xlu1.b32.start.end [1/1] (short) (narrow) %v2252_v47, 8 }
 0x306   : > { %1144 = vxpose.xlu2.b32.start.end [1/1] (short) (narrow) %v2267_v48, 8  ;;  %880 = vxpose.xlu1.b32.start.end [1/1] (short) (narrow) %v2255_v49, 8 }
 0x30e   : > { %976 = vxpose.xlu2.b32.start.end [1/1] (short) (narrow) %v2270_v50, 8 }
 0x38f   : > { %v1128_v51 = vpop.trf.xlu2 }
 0x390   : > { %v1178_v52 = vpack.c.bf16 %v1128_v51, %v1128_v51 }
 0x392   : > { %v1096_v53 = vpop.trf.xlu1  ;;  %v1390_v56 = vsel %vm1347_vm6, %v1178_v52, 0 }
 0x393   : > { %v1177_v54 = vpack.c.bf16 %v1096_v53, %v1096_v53 }
 0x395   : > { %v1371_v55 = vsel %vm1347_vm6, %v1177_v54, 0 }
 0x396   : > { %1380 = vmatpush.bf16.xpose.msra.mxu3 %v1371_v55 }
 0x397   : > { %v960_v57 = vpop.trf.xlu2 }
 0x398   : > { %v1010_v5 = vpack.c.bf16 %v960_v57, %v960_v57 }
 0x39a   : > { %v928_v58 = vpop.trf.xlu1 }
 0x39b   : > { %v1009_v59 = vpack.c.bf16 %v928_v58, %v928_v58 }
 0x39d   : > { %2116 = vmatmul.msk.bf16.vlgmr.msra.gmra.mxu3 %vm1347_vm6, %v1009_v59 }
 0x39e   : > { %1399 = vmatpush.bf16.xpose.msrb.mxu3 %v1390_v56 }
 0x39f   : > { %v1160_v60 = vpop.trf.xlu2 }
 0x3a0   : > { %v1179_v61 = vpack.c.bf16 %v1160_v60, %v1160_v60 }
 0x3a2   : > { %v1064_v62 = vpop.trf.xlu1  ;;  %v1409_v63 = vsel %vm1347_vm6, %v1179_v61, 0 }
 0x3a3   : > { %v1176_v0 = vpack.c.bf16 %v1064_v62, %v1064_v62  ;;  %1418 = vmatpush.bf16.xpose.msrb.mxu0 %v1409_v63 }
 0x3a5   : > { %v1352_v1 = vsel %vm1347_vm6, %v1176_v0, 0 }
 0x3a6   : > { %1361 = vmatpush.bf16.xpose.msra.mxu1 %v1352_v1 }
 0x3a7   : > { %v992_v2 = vpop.trf.xlu2 }
 0x3a8   : > { %v1011_v3 = vpack.c.bf16 %v992_v2, %v992_v2 }
 0x3aa   : > { %2118 = vmatmul.msk.bf16.vlgmr.msrb.gmra.mxu0 %vm1347_vm6, %v1011_v3  ;;  %v896_v4 = vpop.trf.xlu1 }
 0x3ab   : > { %v1008_v6 = vpack.c.bf16 %v896_v4, %v896_v4 }
 0x3ad   : > { %2115 = vmatmul.msk.bf16.vlgmr.msra.gmra.mxu1 %vm1347_vm6, %v1008_v6  ;;  %2117 = vmatmul.msk.bf16.vlgmr.msrb.gmra.mxu3 %vm1347_vm6, %v1010_v5 }
 0x420   : > { %v1382_v8 = vpop.f32.mrf.mxu3 }
 0x421   : > { %v1425_v9 = vmul.f32 0.35355338, %v1382_v8 }
 0x423   : > { %v1433_v10 = vadd.f32 %v2279_v7, %v1425_v9 }
 0x425   : > { %v1439_v11 = vsel %vm1347_vm6, %v1433_v10, -inf }
 0x426   : > { %1440 = vmax.xlane.f32.xlu1 %v1439_v11 }
 0x427   : > { %v1420_v12 = vpop.f32.mrf.mxu0 }
 0x428   : > { %v1427_v13 = vmul.f32 0.35355338, %v1420_v12  ;;  %v1384_v14 = vpop.f32.mrf.mxu3 }
 0x42a   : > { %v1363_v15 = vpop.f32.mrf.mxu1  ;;  %v1435_v16 = vadd.f32 %v2279_v7, %v1427_v13 }
 0x42b   : > { %v1424_v17 = vmul.f32 0.35355338, %v1363_v15 }
 0x42c   : > { %v1445_v18 = vsel %vm1347_vm6, %v1435_v16, -inf }
 0x42d   : > { %v1432_v19 = vadd.f32 %v2279_v7, %v1424_v17 }
 0x42e   : > { %1446 = vmax.xlane.f32.xlu1 %v1445_v18 }
 0x42f   : > { %v1422_v20 = vpop.f32.mrf.mxu0  ;;  %v1436_v21 = vsel %vm1347_vm6, %v1432_v19, -inf }
 0x430   : > { %v1401_v22 = vpop.f32.mrf.mxu3  ;;  %1437 = vmax.xlane.f32.xlu0 %v1436_v21  ;;  %v1565_v20 = vld [vmem:[%s2504_s19] sm:$0xf] }
 0x431   : > { %v1426_v23 = vmul.f32 0.35355338, %v1401_v22  ;;  %v1573_v21 = vsel %vm1487_vm7, %v1565_v20, 0  ;;  %v1566_v22 = vld [vmem:[%s2504_s19 + $0x4] sm:$0xf] }
 0x432   : > { %v1365_v24 = vpop.f32.mrf.mxu1  ;;  %v2281_v20 = vld [vmem:[%s2762_s29] ss:$0 sm:$0xff] }
 0x433   : > { %v1434_v25 = vadd.f32 %v2279_v7, %v1426_v23  ;;  %v1592_v23 = vsel %vm1487_vm7, %v1566_v22, 0  ;;  %v1567_v24 = vld [vmem:[%s2504_s19 + $0x8] sm:$0xf]  ;;  %v2282_v22 = vld [vmem:[%s2763_s0] ss:$0 sm:$0xff] }
 0x435   : > { %v1442_v26 = vsel %vm1347_vm6, %v1434_v25, -inf }
 0x436   : > { %1443 = vmax.xlane.f32.xlu2 %v1442_v26  ;;  %v1568_v26 = vld [vmem:[%s2504_s19 + $0xc] sm:$0xf]  ;;  %s2767_s19 = sld [smem:[#allocation3_spill]] }
 0x438   : > { %v1403_v27 = vpop.f32.mrf.mxu3 }
 0x439   : > { %v1630_v27 = vsel %vm1487_vm7, %v1568_v26, 0 }
 0x43c   : > { %p2168_p8 = scmp.ne.s32.totalorder %s2767_s19, 1 }
 0x447   : > { %1180 = vrot.lane.b32.xlu1 %v2572_v35, %s2353_s1 }
 0x499   : > { %v1441_v28 = vpop.xlane.xlu1 %1440 }
 0x49a   : > { %v1449_v32 = vsub.f32 %v1433_v10, %v1441_v28 }
 0x49c   : > { %v1454_v34 = vmul.f32 1.442695, %v1449_v32 }
 0x4a1   : > { %v1447_v36 = vpop.xlane.xlu1 %1446 }
 0x4a2   : > { %v1451_v38 = vsub.f32 %v1435_v16, %v1447_v36 }
 0x4a3   : > { %v1438_v29 = vpop.xlane.xlu0 %1437 }
 0x4a4   : > { %v1448_v30 = vsub.f32 %v1432_v19, %v1438_v29  ;;  %v1458_v40 = vmul.f32 1.442695, %v1451_v38 }
 0x4a6   : > { %v1452_v33 = vmul.f32 1.442695, %v1448_v30 }
 0x4a8   : > { %2287 = vpow2.f32 %v1452_v33 }
 0x4a9   : > { %2289 = vpow2.f32 %v1454_v34  ;;  %v1444_v41 = vpop.xlane.xlu2 %1443 }
 0x4aa   : > { %2291 = vpow2.f32 %v1458_v40  ;;  %v1450_v43 = vsub.f32 %v1434_v25, %v1444_v41  ;;  %v1611_v25 = vsel %vm1487_vm7, %v1567_v24, 0 }
 0x4ac   : > { %v1456_v45 = vmul.f32 1.442695, %v1450_v43 }
 0x4ae   : > { %v2288_v37 = vpop.eup %2287  ;;  %2293 = vpow2.f32 %v1456_v45 }
 0x4af   : > { %v1460_v39 = vsel %vm1347_vm6, %v2288_v37, 0.0  ;;  %v2290_v42 = vpop.eup %2289 }
 0x4b0   : > { %1461 = vadd.xlane.f32.xlu2 %v1460_v39  ;;  %v1463_v35 = vsel %vm1347_vm6, %v2290_v42, 0.0  ;;  %v2292_v46 = vpop.eup %2291 }
 0x4b1   : > { %v1469_v47 = vsel %vm1347_vm6, %v2292_v46, 0.0 }
 0x4b4   : > { %v2294_v48 = vpop.eup %2293 }
 0x4b5   : > { %v1466_v49 = vsel %vm1347_vm6, %v2294_v48, 0.0 }
 0x4b8   : > { %1464 = vadd.xlane.f32.xlu2 %v1463_v35 }
 0x4b9   : > { %v1181_v44 = vpop.permute.xlu1 %1180 }
 0x4ba   : > { %1183 = vxpose.xlu1.b32.start.end [1/1] (short) (narrow) %v1181_v44, 32 }
 0x4c0   : > { %1470 = vadd.xlane.f32.xlu2 %v1469_v47 }
 0x4c8   : > { %1467 = vadd.xlane.f32.xlu2 %v1466_v49 }
 0x523   : > { %v1462_v55 = vpop.xlane.xlu2 %1461 }
 0x524   : > { %2295 = vrcp.f32 %v1462_v55 }
 0x52a   : > { %v2296_v58 = vpop.eup %2295 }
 0x52b   : > { %v1465_v56 = vpop.xlane.xlu2 %1464  ;;  %v1476_v61 = vmul.f32 %v2296_v58, %v2288_v37 }
 0x52c   : > { %2297 = vrcp.f32 %v1465_v56 }
 0x52d   : > { %v1480_v0 = vpack.c.bf16 %v1476_v61, %v1476_v61 }
 0x532   : > { %v2298_v1 = vpop.eup %2297 }
 0x533   : > { %v1471_v57 = vpop.xlane.xlu2 %1470  ;;  %v1477_v9 = vmul.f32 %v2298_v1, %v2290_v42 }
 0x535   : > { %v1481_v13 = vpack.c.bf16 %v1477_v9, %v1477_v9  ;;  %v2195_v9 = vld [vmem:[%s2535_s21 + $0x38] sm:$0xff] }
 0x53b   : > { %v1468_v59 = vpop.xlane.xlu2 %1467 }
 0x53c   : > { %2299 = vrcp.f32 %v1468_v59 }
 0x53d   : > { %2301 = vrcp.f32 %v1471_v57 }
 0x542   : > { %v2300_v2 = vpop.eup %2299 }
 0x543   : > { %v1478_v6 = vmul.f32 %v2300_v2, %v2294_v48  ;;  %v2302_v14 = vpop.eup %2301 }
 0x544   : > { %v1479_v16 = vmul.f32 %v2302_v14, %v2292_v46 }
 0x545   : > { %v1482_v12 = vpack.c.bf16 %v1478_v6, %v1478_v6 }
 0x546   : > { %v1483_v19 = vpack.c.bf16 %v1479_v16, %v1479_v16 }
 0x55e   : > { %v1199_v50 = vpop.trf.xlu1 }
 0x55f   : > { %1215 = vxpose.xlu0.b32.start.end [1/1] (short) (narrow) %v1199_v50, 8 }
 0x566   : > { %v1200_v51 = vpop.trf.xlu1 }
 0x56e   : > { %v1201_v52 = vpop.trf.xlu1 }
 0x56f   : > { %v2271_v53 = vpack.i.bf16 %v1201_v52, %v1200_v51  ;;  %v2280_v52 = vld [vmem:[%s2761_s6] ss:$0 sm:$0xff] }
 0x571   : > { %2272 = vxpose.xlu2.b32.start.end [1/1] (short) (narrow) %v2271_v53, 8 }
 0x576   : > { %v1202_v54 = vpop.trf.xlu1 }
 0x577   : > { %1311 = vxpose.xlu1.b32.start.end [1/1] (short) (narrow) %v1202_v54, 8 }
 0x603   : > { %v1231_v60 = vpop.trf.xlu0 }
 0x604   : > { %v1343_v62 = vpack.c.bf16 %v1231_v60, %v1231_v60  ;;  %v2354_v60 = vmov 32.0  }
 0x605   : > { %2303 = vrcp.f32 %v2354_v60 }
 0x606   : > { %v1489_v63 = vsel %vm1487_vm7, %v1343_v62, 0 }
 0x607   : > { %1498 = vmatpush.bf16.msrb.mxu1 %v1489_v63 }
 0x60a   : > { %2119 = vmatmul.msk.bf16.vlgmr.msrb.gmra.mxu1 %vm1347_vm6, %v1480_v0  ;;  %v2273_v3 = vpop.trf.xlu2 }
 0x60b   : > { %v2277_v4 = vunpack.i.h.bf16 %v2273_v3  ;;  %v2274_v5 = vunpack.i.l.bf16 %v2273_v3  ;;  %1582 = vmatpush.bf16.msra.mxu1 %v1573_v21  ;;  %v2304_v61 = vpop.eup %2303 }
 0x60c   : > { %v1664_v62 = vmul.f32 32.0, %v2304_v61  ;;  %vm1668_vm8 = vweird.f32 %v2304_v61 }
 0x60d   : > { %v1344_v7 = vpack.c.bf16 %v2274_v5, %v2274_v5  ;;  %v1345_v8 = vpack.c.bf16 %v2277_v4, %v2277_v4 }
 0x60e   : > { %v1665_v63 = vsub.f32 1.0, %v1664_v62 }
 0x60f   : > { %v1508_v10 = vsel %vm1487_vm7, %v1344_v7, 0  ;;  %v1527_v11 = vsel %vm1487_vm7, %v1345_v8, 0  ;;  %v2187_v7 = vld [vmem:[%s2521_s3 + $0x8] sm:$0xff]  ;;  %v2186_v8 = vld [vmem:[%s2521_s3] sm:$0xff]  ;;  %s2768_s3 = sld [smem:[#allocation19_spill]] (!%p2168_p8) }
 0x610   : > { %1517 = vmatpush.bf16.msra.mxu2 %v1508_v10  ;;  %1536 = vmatpush.bf16.msra.mxu3 %v1527_v11  ;;  %v1666_v0 = vmul.f32 %v2304_v61, %v1665_v63 }
 0x611   : > { %1727 = vmatpush.bf16.msrb.mxu1 %v2187_v7 }
 0x612   : > { %v1667_v1 = vadd.f32 %v2304_v61, %v1666_v0 }
 0x613   : > { %2120 = vmatmul.msk.bf16.vlgmr.msra.gmra.mxu2 %vm1347_vm6, %v1481_v13  ;;  %2121 = vmatmul.msk.bf16.vlgmr.msra.gmra.mxu3 %vm1347_vm6, %v1482_v12  ;;  %v2194_v12 = vld [vmem:[%s2535_s21 + $0x30] sm:$0xff] }
 0x614   : > { %1601 = vmatpush.bf16.msrb.mxu2 %v1592_v23  ;;  %1620 = vmatpush.bf16.msrb.mxu3 %v1611_v25  ;;  %v2629_v2 = vsel %vm1668_vm8, %v2304_v61, %v1667_v1 }
 0x615   : > { %1728 = vmatpush.bf16.msrb.mxu1 %v2186_v8 }
 0x618   : > { %1812 = vmatpush.bf16.msra.mxu2 %v2195_v9 }
 0x61b   : > { %v1327_v15 = vpop.trf.xlu1 }
 0x61c   : > { %v1346_v17 = vpack.c.bf16 %v1327_v15, %v1327_v15  ;;  %1813 = vmatpush.bf16.msra.mxu2 %v2194_v12 }
 0x61e   : > { %v1546_v18 = vsel %vm1487_vm7, %v1346_v17, 0 }
 0x61f   : > { %1555 = vmatpush.bf16.msra.mxu0 %v1546_v18 }
 0x622   : > { %2122 = vmatmul.msk.bf16.vlgmr.msra.gmra.mxu0 %vm1347_vm6, %v1483_v19 }
 0x623   : > { %1639 = vmatpush.bf16.msrb.mxu0 %v1630_v27  ;;  %v2193_v27 = vld [vmem:[%s2535_s21 + $0x28] sm:$0xff] }
 0x624   : > { %1814 = vmatpush.bf16.msra.mxu2 %v2193_v27 }
 0x687   : > { %v1500_v28 = vpop.f32.mrf.mxu1 }
 0x688   : > { %v1561_v29 = vpack.c.bf16 %v1500_v28, %v1500_v28  ;;  %v2192_v28 = vld [vmem:[%s2535_s21 + $0x20] sm:$0xff] }
 0x689   : > { %1815 = vmatpush.bf16.msra.mxu2 %v2192_v28 }
 0x68a   : > { %2123 = vmatmul.msk.bf16.vlgmr.msra.gmra.mxu1 %vm1347_vm6, %v1561_v29  ;;  %v2191_v29 = vld [vmem:[%s2535_s21 + $0x18] sm:$0xff] }
 0x68d   : > { %1816 = vmatpush.bf16.msra.mxu2 %v2191_v29 }
 0x68f   : > { %v1502_v30 = vpop.f32.mrf.mxu1 }
 0x690   : > { %v2190_v30 = vld [vmem:[%s2535_s21 + $0x10] sm:$0xff] }
 0x691   : > { %1817 = vmatpush.bf16.msra.mxu2 %v2190_v30 }
 0x696   : > { %v1519_v32 = vpop.f32.mrf.mxu2  ;;  %v1538_v33 = vpop.f32.mrf.mxu3 }
 0x697   : > { %v1562_v34 = vpack.c.bf16 %v1519_v32, %v1519_v32  ;;  %v1563_v36 = vpack.c.bf16 %v1538_v33, %v1538_v33  ;;  %v2189_v32 = vld [vmem:[%s2535_s21 + $0x8] sm:$0xff]  ;;  %v2188_v33 = vld [vmem:[%s2535_s21] sm:$0xff] }
 0x698   : > { %1818 = vmatpush.bf16.msra.mxu2 %v2189_v32 }
 0x699   : > { %2124 = vmatmul.msk.bf16.vlgmr.msrb.gmra.mxu2 %vm1347_vm6, %v1562_v34  ;;  %2125 = vmatmul.msk.bf16.vlgmr.msrb.gmra.mxu3 %vm1347_vm6, %v1563_v36  ;;  %v2283_v34 = vld [vmem:[%s2765_s16] ss:$0 sm:$0xff] }
 0x69c   : > { %1819 = vmatpush.bf16.msra.mxu2 %v2188_v33 }
 0x69e   : > { %v1521_v37 = vpop.f32.mrf.mxu2  ;;  %v1540_v38 = vpop.f32.mrf.mxu3 }
 0x69f   : > { %v1557_v39 = vpop.f32.mrf.mxu0 }
 0x6a0   : > { %v1564_v40 = vpack.c.bf16 %v1557_v39, %v1557_v39 }
 0x6a2   : > { %2126 = vmatmul.msk.bf16.vlgmr.msrb.gmra.mxu0 %vm1347_vm6, %v1564_v40 }
 0x6a7   : > { %v1559_v41 = vpop.f32.mrf.mxu0 }
 0x707   : > { %v1584_v42 = vpop.f32.mrf.mxu1 }
 0x708   : > { %v1645_v45 = vsel %vm831_vm5, %v1584_v42, 0.0 }
 0x70f   : > { %v1586_v43 = vpop.f32.mrf.mxu1 }
 0x71c   : > { %v1603_v35 = vpop.f32.mrf.mxu2  ;;  %v1622_v44 = vpop.f32.mrf.mxu3 }
 0x71d   : > { %v1646_v46 = vsel %vm831_vm5, %v1603_v35, 0.0  ;;  %v1648_v48 = vsel %vm831_vm5, %v1622_v44, 0.0 }
 0x71e   : > { %v1647_v47 = vadd.f32 %v1646_v46, %v1645_v45 }
 0x71f   : > { %v1641_v49 = vpop.f32.mrf.mxu0 }
 0x720   : > { %v1649_v50 = vadd.f32 %v1648_v48, %v1647_v47  ;;  %v1650_v51 = vsel %vm831_vm5, %v1641_v49, 0.0  ;;  %v2284_v48 = vld [vmem:[%s751_s22] ss:$0 sm:$0xff] }
 0x722   : > { %v1651_v53 = vadd.f32 %v1650_v51, %v1649_v50 }
 0x724   : > { %v1656_v54 = vadd.f32 %v2280_v52, %v1651_v53  ;;  %v1605_v55 = vpop.f32.mrf.mxu2  ;;  %v1624_v56 = vpop.f32.mrf.mxu3 }
 0x726   : > { %v1657_v57 = vadd.f32 %v1656_v54, %v2562_v31 }
 0x727   : > { %v1643_v58 = vpop.f32.mrf.mxu0 }
 0x728   : > { %v1660_v59 = vsel %vm831_vm5, %v1657_v57, 0.0 }
 0x729   : > { %1661 = vadd.xlane.f32.xlu2 %v1660_v59 }
 0x79c   : > { %v1662_v3 = vpop.xlane.xlu2 %1661 }
 0x79d   : > { %v1670_v31 = vmul.f32 %v2629_v2, %v1662_v3 }
 0x79f   : > { %v1671_v4 = vsub.f32 %v1657_v57, %v1670_v31 }
 0x7a1   : > { %v1672_v5 = vmul.f32 %v1671_v4, %v1671_v4 }
 0x7a3   : > { %v1673_v6 = vsel %vm831_vm5, %v1672_v5, 0.0 }
 0x7a4   : > { %1674 = vadd.xlane.f32.xlu0 %v1673_v6 }
 0x817   : > { %v1675_v10 = vpop.xlane.xlu0 %1674 }
 0x818   : > { %v1676_v11 = vmul.f32 %v1675_v10, %v2629_v2 }
 0x81a   : > { %v1677_v13 = vadd.f32 1e-12, %v1676_v11 }
 0x81c   : > { %2305 = vrsqrt.f32 %v1677_v13  ;;  %vm1684_vm10 = vweird.f32 %v1677_v13 }
 0x822   : > { %v2306_v14 = vpop.eup %2305 }
 0x823   : > { %v1679_v15 = vmul.f32 %v2306_v14, %v1677_v13  ;;  %vm1685_vm9 = vweird.f32 %v2306_v14 }
 0x824   : > { %vm1686_vm11 = vmor %vm1684_vm10, %vm1685_vm9 }
 0x825   : > { %v1680_v16 = vmul.f32 %v2306_v14, %v1679_v15 }
 0x827   : > { %v1681_v17 = vmul.f32 0.5, %v1680_v16 }
 0x829   : > { %v1682_v18 = vsub.f32 1.5, %v1681_v17 }
 0x82b   : > { %v1683_v19 = vmul.f32 %v2306_v14, %v1682_v18 }
 0x82d   : > { %v1687_v21 = vsel %vm1686_vm11, %v2306_v14, %v1683_v19 }
 0x82e   : > { %v1688_v23 = vmul.f32 %v1687_v21, %v1671_v4  ;;  %v2285_v4 = vld [vmem:[%s754_s25] ss:$0 sm:$0xff] }
 0x830   : > { %v1692_v24 = vmul.f32 %v2281_v20, %v1688_v23 }
 0x832   : > { %v1696_v25 = vadd.f32 %v2282_v22, %v1692_v24 }
 0x834   : > { %v1701_v26 = vpack.c.bf16 %v1696_v25, %v1696_v25 }
 0x836   : > { %2135 = vmatmul.msk.bf16.vlgmr.msrb.gmra.mxu1 %vm831_vm5, %v1701_v26 }
 0x8b3   : > { %v1730_v36 = vpop.f32.mrf.mxu1 }
 0x8b4   : > { %v1731_v37 = vadd.f32 %v2283_v34, %v1730_v36 }
 0x8b6   : > { %v1735_v38 = vmul.f32 0.044715, %v1731_v37  ;;  %v1734_v44 = vmul.f32 0.5, %v1731_v37 }
 0x8b8   : > { %v1736_v39 = vmul.f32 %v1735_v38, %v1731_v37 }
 0x8ba   : > { %v1737_v40 = vmul.f32 %v1736_v39, %v1731_v37 }
 0x8bb   : > { %v1732_v41 = vpop.f32.mrf.mxu1 }
 0x8bc   : > { %v1738_v42 = vadd.f32 %v1737_v40, %v1731_v37 }
 0x8be   : > { %v1739_v43 = vmul.f32 0.7978846, %v1738_v42 }
 0x8c0   : > { %2307 = vtanh.f32 %v1739_v43 }
 0x8c6   : > { %v2308_v35 = vpop.eup %2307 }
 0x8c7   : > { %v1741_v45 = vadd.f32 1.0, %v2308_v35 }
 0x8c9   : > { %v1742_v46 = vmul.f32 %v1741_v45, %v1734_v44 }
 0x8cb   : > { %v1759_v47 = vpack.c.bf16 %v1742_v46, %v1742_v46 }
 0x8cd   : > { %1820 = vmatmul.bf16.vlgmr.msra.gmra.mxu2 %v1759_v47 }
 0x950   : > { %v1821_v49 = vpop.f32.mrf.mxu2 }
 0x951   : > { %v1822_v50 = vadd.f32 %v2284_v48, %v1821_v49 }
 0x953   : > { %v1825_v51 = vadd.f32 %v1822_v50, %v1696_v25 }
 0x955   : > { %v1828_v52 = vsel %vm831_vm5, %v1825_v51, 0.0 }
 0x956   : > { %1829 = vadd.xlane.f32.xlu1 %v1828_v52 }
 0x958   : > { %v1823_v53 = vpop.f32.mrf.mxu2 }
 0x9c9   : > { %v1830_v54 = vpop.xlane.xlu1 %1829 }
 0x9ca   : > { %v1831_v55 = vmul.f32 %v1830_v54, %v2629_v2 }
 0x9cc   : > { %v1832_v56 = vsub.f32 %v1825_v51, %v1831_v55 }
 0x9ce   : > { %v1833_v57 = vmul.f32 %v1832_v56, %v1832_v56 }
 0x9d0   : > { %v1834_v58 = vsel %vm831_vm5, %v1833_v57, 0.0 }
 0x9d1   : > { %1835 = vadd.xlane.f32.xlu2 %v1834_v58 }
 0xa44   : > { %v1836_v59 = vpop.xlane.xlu2 %1835 }
 0xa45   : > { %v1837_v60 = vmul.f32 %v1836_v59, %v2629_v2  ;;  %v2286_v2 = vld [vmem:[%s757_s10] ss:$0 sm:$0xff] }
 0xa47   : > { %v1838_v61 = vadd.f32 1e-12, %v1837_v60 }
 0xa49   : > { %2309 = vrsqrt.f32 %v1838_v61  ;;  %vm1845_vm13 = vweird.f32 %v1838_v61 }
 0xa4f   : > { %v2310_v62 = vpop.eup %2309 }
 0xa50   : > { %v1840_v63 = vmul.f32 %v2310_v62, %v1838_v61  ;;  %vm1846_vm12 = vweird.f32 %v2310_v62 }
 0xa51   : > { %vm1847_vm14 = vmor %vm1845_vm13, %vm1846_vm12 }
 0xa52   : > { %v1841_v0 = vmul.f32 %v2310_v62, %v1840_v63 }
 0xa54   : > { %v1842_v1 = vmul.f32 0.5, %v1841_v0 }
 0xa56   : > { %v1843_v3 = vsub.f32 1.5, %v1842_v1 }
 0xa58   : > { %v1844_v31 = vmul.f32 %v2310_v62, %v1843_v3 }
 0xa5a   : > { %v1848_v5 = vsel %vm1847_vm14, %v2310_v62, %v1844_v31 }
 0xa5b   : > { %v1849_v6 = vmul.f32 %v1848_v5, %v1832_v56 }
 0xa5d   : > { %v1853_v7 = vmul.f32 %v2285_v4, %v1849_v6  ;;  %1862 = sbr.rel (%p2168_p8) target bundleno = 2800 (0xaf0), region = 96 }
 0xa5f   : > { %v1857_v8 = vadd.f32 %v2286_v2, %v1853_v7 }
 0xa61   : > { %1858 = vst.msk [vmem:[#allocation2] sm:$0xff] %vm831_vm5, %v1857_v8 }
 0xa62   : > { %v2197_v9 = vld [vmem:[%s2768_s3 + $0x8] sm:$0xff]  ;;  %v2196_v10 = vld [vmem:[%s2768_s3] sm:$0xff]  ;;  %v1867_v11 = vpack.c.bf16 %v1857_v8, %v1857_v8 }
 0xa63   : > { %1889 = vmatpush.bf16.msra.mxu0 %v2197_v9 }
 0xa67   : > { %1890 = vmatpush.bf16.msra.mxu0 %v2196_v10 }
 0xa6a   : > { %2177 = vmatmul.msk.bf16.vlgmr.msra.gmra.mxu0 %vm831_vm5, %v1867_v11 }
 0xae7   : > { %v1892_v12 = vpop.f32.mrf.mxu0 }
 0xae8   : > { %1896 = vst [vmem:[%s2548_s11] sm:$0xff] %v1892_v12 }
 0xaef   : > { %v1894_v13 = vpop.f32.mrf.mxu0 }
 0xaf0 PF: > { %s2769_s10 = sld [smem:[#allocation6_spill]] }
 0xaf1   : > { %s2770_s24 = sld [smem:[#allocation4_spill]] }
 0xaf2   : > { %s2771_s25 = sld [smem:[#allocation5_spill]] }
 0xaf3   : > { %s2772_s26 = sld [smem:[#allocation7_spill]] }
 0xaf4   : > { %s2773_s27 = sld [smem:[#allocation8_spill]] }
 0xaf6   : > { %s27_s28 = sadd.s32 1, %s2769_s10  }
 0xaf7   : > { %p24_p9 = scmp.ge.s32.totalorder %s27_s28, 6  }
 0xaf9   :  { %26 = sbr.rel (!%p24_p9) target bundleno = 12 (0xc), region = 165 }

</bundles_post_ra>
